<compile_context>
chip_gen: v7x
topology: tpu7x:2x2x1
jax: 0.10.0
libtpu: 0.0.40
codegen_flags: <defaults>
</compile_context>

<pallas_src>
import functools

import jax
import jax.numpy as jnp
from jax.experimental import pallas as pl
from jax.experimental.pallas import tpu as pltpu


def _dcl_kernel(x_ref, w1_ref, b1_ref, w2_ref, b2_ref, o_ref, xpad_ref, *,
                NB, C, W, HW, d, LP):
    """One batch-block (NB images, lane-concatenated) per grid step.

    x_ref   : (NB, C, HW)        input, spatial flattened on the lane axis
    w1_ref  : (C, 9*C)           im2col 3x3 weights, columns ordered (ky, kx, c_in)
    b1_ref  : (C, 1)             conv3x3 bias
    w2_ref  : (C, C)             1x1 conv weights (out, in)
    b2_ref  : (C, 1)             conv1x1 bias
    o_ref   : (NB, C, HW)        output
    xpad_ref: (C, NB*(LP+HW)+LP) flat images separated by 128-lane zero gutters
    """
    SEG = LP + HW                       # per-image stride inside xpad
    NHW = NB * HW

    # --- stage input: zero only the gutters, then aligned interior stores ---
    for j in range(NB + 1):
        xpad_ref[:, j * SEG:j * SEG + LP] = jnp.zeros((C, LP), jnp.float32)
    for j in range(NB):
        xpad_ref[:, LP + j * SEG:LP + j * SEG + HW] = x_ref[j]

    # --- horizontal wrap masks, built in registers (no extra operand/DMA) ---
    col = jax.lax.broadcasted_iota(jnp.int32, (C, NHW), 1) % W
    ok_lo = col >= d                    # lanes where the dx = -d tap stays in-row
    ok_hi = col < (W - d)               # lanes where the dx = +d tap stays in-row

    # --- 9 dilated taps as register values: contiguous lane slices of xpad ---
    # Vertical out-of-range reads land in the zero gutters; the only reads that
    # escape back into an image are exactly the lanes killed by ok_lo / ok_hi.
    taps = []
    for ky in range(3):
        for kx in range(3):
            dy, dx = (ky - 1) * d, (kx - 1) * d
            off = dy * W + dx
            pieces = [xpad_ref[:, LP + j * SEG + off:LP + j * SEG + off + HW]
                      for j in range(NB)]
            t = pieces[0] if NB == 1 else jnp.concatenate(pieces, axis=1)
            if dx < 0:
                t = jnp.where(ok_lo, t, 0.0)
            elif dx > 0:
                t = jnp.where(ok_hi, t, 0.0)
            taps.append(t)
    patch = jnp.concatenate(taps, axis=0)          # (9*C, NB*HW), registers only

    # --- dilated 3x3 conv as ONE MXU matmul, then bias + ReLU (lane-major) ---
    h = jnp.dot(w1_ref[...], patch, preferred_element_type=jnp.float32)
    h = jnp.maximum(h + b1_ref[...], 0.0)

    # --- 1x1 conv + bias, issued back-to-back with the first dot ---
    y = jnp.dot(w2_ref[...], h, preferred_element_type=jnp.float32) + b2_ref[...]

    # --- residual add + per-image lane-dense stores (full-width vst) ---
    for j in range(NB):
        x_in = xpad_ref[:, LP + j * SEG:LP + j * SEG + HW]
        o_ref[j] = (x_in + y[:, j * HW:(j + 1) * HW]).astype(o_ref.dtype)


def dcl_forward(x_nchw, w1_oihw, b1, w2_oihw, b2, *, dilation):
    """x_nchw: (N, C, H, W) f32; weights in PyTorch layouts. Returns (N, C, H, W)."""
    N, C, H, W = x_nchw.shape
    d = dilation
    HW = H * W
    LP = 128                                    # zero-gutter width (lane aligned)
    assert d < H and d < W, "dilation must be smaller than the spatial dims"
    assert d * W + d <= LP, "flat halo must fit inside the 128-lane gutter"
    assert HW % 128 == 0, "flattened spatial dim must be a multiple of 128 lanes"

    # Fold as many images as possible into one grid step (lane axis <= 1024).
    cap = max(1, 1024 // HW)
    NB = 1
    for nb in range(1, N + 1):
        if N % nb == 0 and nb <= cap:
            NB = nb
    grid = (N // NB,)
    SEG = LP + HW

    x_flat = x_nchw.reshape(N, C, HW)           # free reshape: no transpose / pad

    # im2col weight: (C_out, 9*C_in), column order (ky, kx, c_in) — matches patch.
    w1r = jnp.transpose(w1_oihw, (0, 2, 3, 1)).reshape(C, 9 * C)
    w2r = w2_oihw[:, :, 0, 0]
    b1c = b1.reshape(C, 1)
    b2c = b2.reshape(C, 1)

    kernel = functools.partial(_dcl_kernel, NB=NB, C=C, W=W, HW=HW, d=d, LP=LP)

    out_flat = pl.pallas_call(
        kernel,
        out_shape=jax.ShapeDtypeStruct((N, C, HW), x_nchw.dtype),
        grid_spec=pltpu.PrefetchScalarGridSpec(
            num_scalar_prefetch=0,
            grid=grid,                           # batch blocks; parallel across TCs
            in_specs=[
                pl.BlockSpec((NB, C, HW), lambda b: (b, 0, 0)),
                pl.BlockSpec((C, 9 * C), lambda b: (0, 0)),
                pl.BlockSpec((C, 1), lambda b: (0, 0)),
                pl.BlockSpec((C, C), lambda b: (0, 0)),
                pl.BlockSpec((C, 1), lambda b: (0, 0)),
            ],
            out_specs=pl.BlockSpec((NB, C, HW), lambda b: (b, 0, 0)),
            scratch_shapes=[
                pltpu.VMEM((C, NB * SEG + LP), jnp.float32),  # gutter-padded images
            ],
        ),
        compiler_params=pltpu.CompilerParams(
            dimension_semantics=("parallel",)),
    )(x_flat, w1r, b1c, w2r, b2c)

    return out_flat.reshape(N, C, H, W)


def dcl_reference(x, w1, b1, w2, b2, *, dilation):
    """Pure-JAX reference (NCHW / OIHW), full precision."""
    d = dilation
    dn = jax.lax.conv_dimension_numbers(x.shape, w1.shape, ("NCHW", "OIHW", "NCHW"))
    h = jax.lax.conv_general_dilated(
        x, w1, window_strides=(1, 1), padding=[(d, d), (d, d)],
        rhs_dilation=(d, d), dimension_numbers=dn,
        precision=jax.lax.Precision.HIGHEST)
    h = jax.nn.relu(h + b1[None, :, None, None])
    dn2 = jax.lax.conv_dimension_numbers(h.shape, w2.shape, ("NCHW", "OIHW", "NCHW"))
    out = jax.lax.conv_general_dilated(
        h, w2, window_strides=(1, 1), padding=[(0, 0), (0, 0)],
        dimension_numbers=dn2, precision=jax.lax.Precision.HIGHEST)
    out = out + b2[None, :, None, None]
    return x + out


if __name__ == "__main__":
    # DCl(stride=2, in_ch=4): padding == dilation == 2; input (2, 4, 16, 16).
    N, C, H, W = 2, 4, 16, 16
    dilation = 2

    key = jax.random.PRNGKey(0)
    k_x, k_w1, k_b1, k_w2, k_b2 = jax.random.split(key, 5)

    x = jax.random.normal(k_x, (N, C, H, W), dtype=jnp.float32)
    w1 = jax.random.normal(k_w1, (C, C, 3, 3), dtype=jnp.float32) * 0.1
    b1 = jax.random.normal(k_b1, (C,), dtype=jnp.float32) * 0.1
    w2 = jax.random.normal(k_w2, (C, C, 1, 1), dtype=jnp.float32) * 0.1
    b2 = jax.random.normal(k_b2, (C,), dtype=jnp.float32) * 0.1

    out = jax.block_until_ready(dcl_forward(x, w1, b1, w2, b2, dilation=dilation))
    ref = jax.block_until_ready(dcl_reference(x, w1, b1, w2, b2, dilation=dilation))

    assert out.shape == (N, C, H, W)
    assert jnp.allclose(out, ref, atol=1e-4, rtol=1e-4), "mismatch vs reference"

    print("KERNEL_OK")
</pallas_src>

<mosaic_0001>
module attributes {stable_mosaic.version = 11 : i64} {
  func.func @_dcl_kernel(%arg0: i32, %arg1: memref<2x4x256xf32, #tpu.memory_space<vmem>>, %arg2: memref<4x36xf32, #tpu.memory_space<vmem>>, %arg3: memref<4x1xf32, #tpu.memory_space<vmem>>, %arg4: memref<4x4xf32, #tpu.memory_space<vmem>>, %arg5: memref<4x1xf32, #tpu.memory_space<vmem>>, %arg6: memref<2x4x256xf32, #tpu.memory_space<vmem>>, %arg7: memref<4x896xf32, #tpu.memory_space<vmem>>) attributes {dimension_semantics = [#tpu.dimension_semantics<parallel>], iteration_bounds = array<i64: 1>, scalar_prefetch = 0 : i64, scratch_operands = 1 : i64, tpu.core_type = #tpu.core_type<tc>, window_params = [{transform_indices = @transform_0, window_bounds = array<i64: 2, 4, 256>}, {pipeline_mode = #tpu.pipeline_mode<synchronous>, transform_indices = @transform_1, window_bounds = array<i64: 4, 36>}, {pipeline_mode = #tpu.pipeline_mode<synchronous>, transform_indices = @transform_2, window_bounds = array<i64: 4, 1>}, {pipeline_mode = #tpu.pipeline_mode<synchronous>, transform_indices = @transform_3, window_bounds = array<i64: 4, 4>}, {pipeline_mode = #tpu.pipeline_mode<synchronous>, transform_indices = @transform_4, window_bounds = array<i64: 4, 1>}, {transform_indices = @transform_5, window_bounds = array<i64: 2, 4, 256>}]} {
    %cst = arith.constant 0.000000e+00 : f32
    %0 = vector.broadcast %cst : f32 to vector<4x128xf32>
    %c0 = arith.constant 0 : index
    %c0_0 = arith.constant 0 : index
    %1 = vector.load %arg7[%c0, %c0_0] : memref<4x896xf32, #tpu.memory_space<vmem>>, vector<4x128xf32>
    tpu.vector_store %arg7[%c0, %c0_0], %0 {strides = array<i32>} : memref<4x896xf32, #tpu.memory_space<vmem>>, vector<4x128xf32>,
    %cst_1 = arith.constant 0.000000e+00 : f32
    %2 = vector.broadcast %cst_1 : f32 to vector<4x128xf32>
    %c0_2 = arith.constant 0 : index
    %c384 = arith.constant 384 : index
    %3 = vector.load %arg7[%c0_2, %c384] : memref<4x896xf32, #tpu.memory_space<vmem>>, vector<4x128xf32>
    tpu.vector_store %arg7[%c0_2, %c384], %2 {strides = array<i32>} : memref<4x896xf32, #tpu.memory_space<vmem>>, vector<4x128xf32>,
    %cst_3 = arith.constant 0.000000e+00 : f32
    %4 = vector.broadcast %cst_3 : f32 to vector<4x128xf32>
    %c0_4 = arith.constant 0 : index
    %c768 = arith.constant 768 : index
    %5 = vector.load %arg7[%c0_4, %c768] : memref<4x896xf32, #tpu.memory_space<vmem>>, vector<4x128xf32>
    tpu.vector_store %arg7[%c0_4, %c768], %4 {strides = array<i32>} : memref<4x896xf32, #tpu.memory_space<vmem>>, vector<4x128xf32>,
    %c0_5 = arith.constant 0 : index
    %c0_6 = arith.constant 0 : index
    %c0_7 = arith.constant 0 : index
    %6 = vector.load %arg1[%c0_5, %c0_6, %c0_7] : memref<2x4x256xf32, #tpu.memory_space<vmem>>, vector<1x4x256xf32>
    %7 = vector.shape_cast %6 : vector<1x4x256xf32> to vector<4x256xf32>
    %c0_8 = arith.constant 0 : index
    %c128 = arith.constant 128 : index
    %8 = vector.load %arg7[%c0_8, %c128] : memref<4x896xf32, #tpu.memory_space<vmem>>, vector<4x256xf32>
    tpu.vector_store %arg7[%c0_8, %c128], %7 {strides = array<i32>} : memref<4x896xf32, #tpu.memory_space<vmem>>, vector<4x256xf32>,
    %c1 = arith.constant 1 : index
    %c0_9 = arith.constant 0 : index
    %c0_10 = arith.constant 0 : index
    %9 = vector.load %arg1[%c1, %c0_9, %c0_10] : memref<2x4x256xf32, #tpu.memory_space<vmem>>, vector<1x4x256xf32>
    %10 = vector.shape_cast %9 : vector<1x4x256xf32> to vector<4x256xf32>
    %c0_11 = arith.constant 0 : index
    %c512 = arith.constant 512 : index
    %11 = vector.load %arg7[%c0_11, %c512] : memref<4x896xf32, #tpu.memory_space<vmem>>, vector<4x256xf32>
    tpu.vector_store %arg7[%c0_11, %c512], %10 {strides = array<i32>} : memref<4x896xf32, #tpu.memory_space<vmem>>, vector<4x256xf32>,
    %12 = tpu.iota {dimensions = array<i32: 1>} : vector<4x512xi32>
    %c16_i32 = arith.constant 16 : i32
    %c0_i32 = arith.constant 0 : i32
    %13 = arith.cmpi eq, %c16_i32, %c0_i32 : i32
    %c1_i32 = arith.constant 1 : i32
    %14 = arith.select %13, %c1_i32, %c16_i32 : i32
    %15 = vector.broadcast %14 : i32 to vector<4x512xi32>
    %16 = arith.remsi %12, %15 : vector<4x512xi32>
    %c0_i32_12 = arith.constant 0 : i32
    %17 = vector.broadcast %c0_i32_12 : i32 to vector<4x512xi32>
    %18 = arith.cmpi ne, %16, %17 : vector<4x512xi32>
    %c0_i32_13 = arith.constant 0 : i32
    %19 = vector.broadcast %c0_i32_13 : i32 to vector<4x512xi32>
    %20 = arith.cmpi slt, %16, %19 : vector<4x512xi32>
    %c0_i32_14 = arith.constant 0 : i32
    %21 = arith.cmpi slt, %14, %c0_i32_14 : i32
    %22 = vector.broadcast %21 : i1 to vector<4x512xi1>
    %23 = vector.broadcast %22 : vector<4x512xi1> to vector<4x512xi1>
    %24 = arith.xori %20, %23 : vector<4x512xi1>
    %25 = arith.andi %24, %18 : vector<4x512xi1>
    %26 = vector.broadcast %14 : i32 to vector<4x512xi32>
    %27 = arith.addi %16, %26 : vector<4x512xi32>
    %28 = arith.select %25, %27, %16 : vector<4x512xi1>, vector<4x512xi32>
    %c2_i32 = arith.constant 2 : i32
    %29 = vector.broadcast %c2_i32 : i32 to vector<4x512xi32>
    %30 = arith.cmpi sge, %28, %29 : vector<4x512xi32>
    %c14_i32 = arith.constant 14 : i32
    %31 = vector.broadcast %c14_i32 : i32 to vector<4x512xi32>
    %32 = arith.cmpi slt, %28, %31 : vector<4x512xi32>
    %c0_15 = arith.constant 0 : index
    %c94 = arith.constant 94 : index
    %33 = vector.load %arg7[%c0_15, %c94] : memref<4x896xf32, #tpu.memory_space<vmem>>, vector<4x256xf32>
    %c0_16 = arith.constant 0 : index
    %c478 = arith.constant 478 : index
    %34 = vector.load %arg7[%c0_16, %c478] : memref<4x896xf32, #tpu.memory_space<vmem>>, vector<4x256xf32>
    %35 = tpu.concatenate %33, %34 in 1 : vector<4x256xf32>, vector<4x256xf32> -> vector<4x512xf32>
    %cst_17 = arith.constant 0.000000e+00 : f32
    %36 = vector.broadcast %cst_17 : f32 to vector<4x512xf32>
    %37 = arith.select %30, %35, %36 : vector<4x512xi1>, vector<4x512xf32>
    %c0_18 = arith.constant 0 : index
    %c96 = arith.constant 96 : index
    %38 = vector.load %arg7[%c0_18, %c96] : memref<4x896xf32, #tpu.memory_space<vmem>>, vector<4x256xf32>
    %c0_19 = arith.constant 0 : index
    %c480 = arith.constant 480 : index
    %39 = vector.load %arg7[%c0_19, %c480] : memref<4x896xf32, #tpu.memory_space<vmem>>, vector<4x256xf32>
    %40 = tpu.concatenate %38, %39 in 1 : vector<4x256xf32>, vector<4x256xf32> -> vector<4x512xf32>
    %c0_20 = arith.constant 0 : index
    %c98 = arith.constant 98 : index
    %41 = vector.load %arg7[%c0_20, %c98] : memref<4x896xf32, #tpu.memory_space<vmem>>, vector<4x256xf32>
    %c0_21 = arith.constant 0 : index
    %c482 = arith.constant 482 : index
    %42 = vector.load %arg7[%c0_21, %c482] : memref<4x896xf32, #tpu.memory_space<vmem>>, vector<4x256xf32>
    %43 = tpu.concatenate %41, %42 in 1 : vector<4x256xf32>, vector<4x256xf32> -> vector<4x512xf32>
    %cst_22 = arith.constant 0.000000e+00 : f32
    %44 = vector.broadcast %cst_22 : f32 to vector<4x512xf32>
    %45 = arith.select %32, %43, %44 : vector<4x512xi1>, vector<4x512xf32>
    %c0_23 = arith.constant 0 : index
    %c126 = arith.constant 126 : index
    %46 = vector.load %arg7[%c0_23, %c126] : memref<4x896xf32, #tpu.memory_space<vmem>>, vector<4x256xf32>
    %c0_24 = arith.constant 0 : index
    %c510 = arith.constant 510 : index
    %47 = vector.load %arg7[%c0_24, %c510] : memref<4x896xf32, #tpu.memory_space<vmem>>, vector<4x256xf32>
    %48 = tpu.concatenate %46, %47 in 1 : vector<4x256xf32>, vector<4x256xf32> -> vector<4x512xf32>
    %cst_25 = arith.constant 0.000000e+00 : f32
    %49 = vector.broadcast %cst_25 : f32 to vector<4x512xf32>
    %50 = arith.select %30, %48, %49 : vector<4x512xi1>, vector<4x512xf32>
    %c0_26 = arith.constant 0 : index
    %c128_27 = arith.constant 128 : index
    %51 = vector.load %arg7[%c0_26, %c128_27] : memref<4x896xf32, #tpu.memory_space<vmem>>, vector<4x256xf32>
    %c0_28 = arith.constant 0 : index
    %c512_29 = arith.constant 512 : index
    %52 = vector.load %arg7[%c0_28, %c512_29] : memref<4x896xf32, #tpu.memory_space<vmem>>, vector<4x256xf32>
    %53 = tpu.concatenate %51, %52 in 1 : vector<4x256xf32>, vector<4x256xf32> -> vector<4x512xf32>
    %c0_30 = arith.constant 0 : index
    %c130 = arith.constant 130 : index
    %54 = vector.load %arg7[%c0_30, %c130] : memref<4x896xf32, #tpu.memory_space<vmem>>, vector<4x256xf32>
    %c0_31 = arith.constant 0 : index
    %c514 = arith.constant 514 : index
    %55 = vector.load %arg7[%c0_31, %c514] : memref<4x896xf32, #tpu.memory_space<vmem>>, vector<4x256xf32>
    %56 = tpu.concatenate %54, %55 in 1 : vector<4x256xf32>, vector<4x256xf32> -> vector<4x512xf32>
    %cst_32 = arith.constant 0.000000e+00 : f32
    %57 = vector.broadcast %cst_32 : f32 to vector<4x512xf32>
    %58 = arith.select %32, %56, %57 : vector<4x512xi1>, vector<4x512xf32>
    %c0_33 = arith.constant 0 : index
    %c158 = arith.constant 158 : index
    %59 = vector.load %arg7[%c0_33, %c158] : memref<4x896xf32, #tpu.memory_space<vmem>>, vector<4x256xf32>
    %c0_34 = arith.constant 0 : index
    %c542 = arith.constant 542 : index
    %60 = vector.load %arg7[%c0_34, %c542] : memref<4x896xf32, #tpu.memory_space<vmem>>, vector<4x256xf32>
    %61 = tpu.concatenate %59, %60 in 1 : vector<4x256xf32>, vector<4x256xf32> -> vector<4x512xf32>
    %cst_35 = arith.constant 0.000000e+00 : f32
    %62 = vector.broadcast %cst_35 : f32 to vector<4x512xf32>
    %63 = arith.select %30, %61, %62 : vector<4x512xi1>, vector<4x512xf32>
    %c0_36 = arith.constant 0 : index
    %c160 = arith.constant 160 : index
    %64 = vector.load %arg7[%c0_36, %c160] : memref<4x896xf32, #tpu.memory_space<vmem>>, vector<4x256xf32>
    %c0_37 = arith.constant 0 : index
    %c544 = arith.constant 544 : index
    %65 = vector.load %arg7[%c0_37, %c544] : memref<4x896xf32, #tpu.memory_space<vmem>>, vector<4x256xf32>
    %66 = tpu.concatenate %64, %65 in 1 : vector<4x256xf32>, vector<4x256xf32> -> vector<4x512xf32>
    %c0_38 = arith.constant 0 : index
    %c162 = arith.constant 162 : index
    %67 = vector.load %arg7[%c0_38, %c162] : memref<4x896xf32, #tpu.memory_space<vmem>>, vector<4x256xf32>
    %c0_39 = arith.constant 0 : index
    %c546 = arith.constant 546 : index
    %68 = vector.load %arg7[%c0_39, %c546] : memref<4x896xf32, #tpu.memory_space<vmem>>, vector<4x256xf32>
    %69 = tpu.concatenate %67, %68 in 1 : vector<4x256xf32>, vector<4x256xf32> -> vector<4x512xf32>
    %cst_40 = arith.constant 0.000000e+00 : f32
    %70 = vector.broadcast %cst_40 : f32 to vector<4x512xf32>
    %71 = arith.select %32, %69, %70 : vector<4x512xi1>, vector<4x512xf32>
    %72 = tpu.concatenate %37, %40, %45, %50, %53, %58, %63, %66, %71 in 0 : vector<4x512xf32>, vector<4x512xf32>, vector<4x512xf32>, vector<4x512xf32>, vector<4x512xf32>, vector<4x512xf32>, vector<4x512xf32>, vector<4x512xf32>, vector<4x512xf32> -> vector<36x512xf32>
    %c0_41 = arith.constant 0 : index
    %c0_42 = arith.constant 0 : index
    %73 = vector.load %arg2[%c0_41, %c0_42] : memref<4x36xf32, #tpu.memory_space<vmem>>, vector<4x36xf32>
    %cst_43 = arith.constant dense<0.000000e+00> : vector<4x512xf32>
    %74 = tpu.matmul %73, %72, %cst_43 {dimension_numbers = #tpu.dot_dimension_numbers<[1], [0], [0], [1], [0, 0, 1, 1], [], []>} : vector<4x36xf32>, vector<36x512xf32>, vector<4x512xf32> -> vector<4x512xf32>
    %c0_44 = arith.constant 0 : index
    %c0_45 = arith.constant 0 : index
    %75 = vector.load %arg3[%c0_44, %c0_45] : memref<4x1xf32, #tpu.memory_space<vmem>>, vector<4x1xf32>
    %76 = vector.broadcast %75 : vector<4x1xf32> to vector<4x512xf32>
    %77 = arith.addf %74, %76 : vector<4x512xf32>
    %cst_46 = arith.constant 0.000000e+00 : f32
    %78 = vector.broadcast %cst_46 : f32 to vector<4x512xf32>
    %79 = arith.maximumf %77, %78 : vector<4x512xf32>
    %c0_47 = arith.constant 0 : index
    %c0_48 = arith.constant 0 : index
    %80 = vector.load %arg4[%c0_47, %c0_48] : memref<4x4xf32, #tpu.memory_space<vmem>>, vector<4x4xf32>
    %cst_49 = arith.constant dense<0.000000e+00> : vector<4x512xf32>
    %81 = tpu.matmul %80, %79, %cst_49 {dimension_numbers = #tpu.dot_dimension_numbers<[1], [0], [0], [1], [0, 0, 1, 1], [], []>} : vector<4x4xf32>, vector<4x512xf32>, vector<4x512xf32> -> vector<4x512xf32>
    %c0_50 = arith.constant 0 : index
    %c0_51 = arith.constant 0 : index
    %82 = vector.load %arg5[%c0_50, %c0_51] : memref<4x1xf32, #tpu.memory_space<vmem>>, vector<4x1xf32>
    %83 = vector.broadcast %82 : vector<4x1xf32> to vector<4x512xf32>
    %84 = arith.addf %81, %83 : vector<4x512xf32>
    %c0_52 = arith.constant 0 : index
    %c128_53 = arith.constant 128 : index
    %85 = vector.load %arg7[%c0_52, %c128_53] : memref<4x896xf32, #tpu.memory_space<vmem>>, vector<4x256xf32>
    %86 = vector.extract_strided_slice %84 {offsets = [0, 0], sizes = [4, 256], strides = [1, 1]} : vector<4x512xf32> to vector<4x256xf32>
    %87 = arith.addf %85, %86 : vector<4x256xf32>
    %c0_54 = arith.constant 0 : index
    %c0_55 = arith.constant 0 : index
    %c0_56 = arith.constant 0 : index
    %88 = vector.load %arg6[%c0_54, %c0_55, %c0_56] : memref<2x4x256xf32, #tpu.memory_space<vmem>>, vector<1x4x256xf32>
    %89 = vector.shape_cast %88 : vector<1x4x256xf32> to vector<4x256xf32>
    %90 = vector.shape_cast %87 : vector<4x256xf32> to vector<1x4x256xf32>
    tpu.vector_store %arg6[%c0_54, %c0_55, %c0_56], %90 {strides = array<i32>} : memref<2x4x256xf32, #tpu.memory_space<vmem>>, vector<1x4x256xf32>,
    %c0_57 = arith.constant 0 : index
    %c512_58 = arith.constant 512 : index
    %91 = vector.load %arg7[%c0_57, %c512_58] : memref<4x896xf32, #tpu.memory_space<vmem>>, vector<4x256xf32>
    %92 = vector.extract_strided_slice %84 {offsets = [0, 256], sizes = [4, 256], strides = [1, 1]} : vector<4x512xf32> to vector<4x256xf32>
    %93 = arith.addf %91, %92 : vector<4x256xf32>
    %c1_59 = arith.constant 1 : index
    %c0_60 = arith.constant 0 : index
    %c0_61 = arith.constant 0 : index
    %94 = vector.load %arg6[%c1_59, %c0_60, %c0_61] : memref<2x4x256xf32, #tpu.memory_space<vmem>>, vector<1x4x256xf32>
    %95 = vector.shape_cast %94 : vector<1x4x256xf32> to vector<4x256xf32>
    %96 = vector.shape_cast %93 : vector<4x256xf32> to vector<1x4x256xf32>
    tpu.vector_store %arg6[%c1_59, %c0_60, %c0_61], %96 {strides = array<i32>} : memref<2x4x256xf32, #tpu.memory_space<vmem>>, vector<1x4x256xf32>,
    return
  }
  func.func @transform_0(%arg0: i32) -> (i32, i32, i32) {
    %c0_i32 = arith.constant 0 : i32
    %c0_i32_0 = arith.constant 0 : i32
    %c0_i32_1 = arith.constant 0 : i32
    return %arg0, %c0_i32, %c0_i32_0 : i32, i32, i32
  }
  func.func @transform_1(%arg0: i32) -> (i32, i32) {
    %c0_i32 = arith.constant 0 : i32
    %c0_i32_0 = arith.constant 0 : i32
    %c0_i32_1 = arith.constant 0 : i32
    return %c0_i32, %c0_i32_0 : i32, i32
  }
  func.func @transform_2(%arg0: i32) -> (i32, i32) {
    %c0_i32 = arith.constant 0 : i32
    %c0_i32_0 = arith.constant 0 : i32
    %c0_i32_1 = arith.constant 0 : i32
    return %c0_i32, %c0_i32_0 : i32, i32
  }
  func.func @transform_3(%arg0: i32) -> (i32, i32) {
    %c0_i32 = arith.constant 0 : i32
    %c0_i32_0 = arith.constant 0 : i32
    %c0_i32_1 = arith.constant 0 : i32
    return %c0_i32, %c0_i32_0 : i32, i32
  }
  func.func @transform_4(%arg0: i32) -> (i32, i32) {
    %c0_i32 = arith.constant 0 : i32
    %c0_i32_0 = arith.constant 0 : i32
    %c0_i32_1 = arith.constant 0 : i32
    return %c0_i32, %c0_i32_0 : i32, i32
  }
  func.func @transform_5(%arg0: i32) -> (i32, i32, i32) {
    %c0_i32 = arith.constant 0 : i32
    %c0_i32_0 = arith.constant 0 : i32
    %c0_i32_1 = arith.constant 0 : i32
    return %arg0, %c0_i32, %c0_i32_0 : i32, i32, i32
  }
}

</mosaic_0001>

<bundles_post_ra>
// kernel: tpu_custom_call.1
= control target key start
LH: loop header
LB: loop body
LE: loop exit
PB: predicated region body
PF: predicated region fallthrough
CT: control target
= control target key end

     0   :  { %10 = vsyncpa [#allocation4], 0  ;;  %s1196_s0 = inlined_call_operand.hbm [shape: f32[2,4,256], index: 0, kind: input, shape index: {}]   ;;  %s1197_s1 = inlined_call_operand.vmem [shape: f32[4,36], index: 1, kind: input, shape index: {}]   ;;  %s1198_s2 = inlined_call_operand.vmem [shape: f32[4,1], index: 2, kind: input, shape index: {}]   ;;  %s1199_s3 = inlined_call_operand.vmem [shape: f32[4,4], index: 3, kind: input, shape index: {}]   ;;  %s1200_s4 = inlined_call_operand.vmem [shape: f32[4,1], index: 4, kind: input, shape index: {}]   ;;  %s1201_s5 = inlined_call_operand.hbm [shape: f32[2,4,256], index: 5, kind: output, shape index: {}]  }
   0x1   :  { %11 = vsyncpa [#allocation5], 0  ;;  %s936_s18 = smov [#allocation3]   ;;  %s888_s22 = scalar_lea.hbm %s1196_s0, 256 }
   0x2   :  { %s17_s19 = sshll.u32 %s936_s18, 4  ;;  %p889_p0 = scmp.ne.s32.totalorder %s1196_s0, %s888_s22  ;;  %s18_s19 = int_to_ptr.vmem [resolvable:$true] %s17_s19 }
   0x3   :  { %p892_p1 = scmp.lt.u32.totalorder %s888_s22, %s1196_s0 }
   0x5   :  { %p894_p2 = pnand %p892_p1, %p889_p0 }
   0x7   :  { %897 = shalt.err (!%p894_p2)
}
   0x8   :  { %s898_s27 = scalar_lea.vmem %s18_s19, 256  ;;  %p903_p4 = scmp.lt.s32.totalorder %s18_s19, %s18_s19 }
   0x9   :  { %p899_p3 = scmp.ne.s32.totalorder %s18_s19, %s898_s27  ;;  %p904_p5 = scmp.lt.s32.totalorder %s898_s27, %s898_s27 }
   0xb   :  { %p905_p6 = por %p904_p5, %p903_p4 }
   0xd   :  { %p906_p7 = pnand %p905_p6, %p899_p3 }
   0xf   :  { %909 = shalt.err (!%p906_p7)
}
  0x10   :  { %s937_s28 = smov 128   ;;  %s938_s29 = smov 8  }
  0x11   :  { %23 = dma.hbm_to_vmem [thread:$0]  %s1196_s0, 256, %s18_s19, [#allocation4], %s937_s28, %s937_s28, %s938_s29  }
  0x12   :  { %932 = dma.done.wait [#allocation4], 256  }
  0x13   :  { %933 = vsyncadd [#allocation4], 4294967040  ;;  %v939_v0 = vmov 0.0   ;;  %v1000_v1 = vld [vmem:[#allocation3] sm:$0xff]  ;;  %v1002_v2 = vld [vmem:[#allocation3 + $0x8] sm:$0xff]  ;;  %s940_s0 = smov 32   ;;  %v43_v21 = vlaneseq }
  0x14   :  { %35 = vst [vmem:[#allocation2] sm:$0xf] %v939_v0  ;;  %36 = vst [vmem:[#allocation2 + $0xc] sm:$0xf] %v939_v0  ;;  %457 = vmatprep.mubr.f32.mxu0 %v939_v0  ;;  %528 = vmatprep.mubr.f32.mxu1 %v939_v0  ;;  %s941_s7 = smov 2   ;;  %s942_s8 = smov 34   ;;  %v1008_v12 = vcombine.high %v1002_v2, %v1002_v2  ;;  %v1012_v13 = vcombine.high %v1000_v1, %v1000_v1 }
  0x15   :  { %37 = vst [vmem:[#allocation2 + $0x18] sm:$0xf] %v939_v0  ;;  %39 = vst [vmem:[#allocation2 + $0x4] sm:$0xff] %v1000_v1  ;;  %s943_s9 = smov 30   ;;  %s944_s10 = smov 126   ;;  %v847_v18 = vpack.i.bf16 %v1002_v2, %v1000_v1  ;;  %v948_v19 = vmov 0  }
  0x16   :  { %42 = vst [vmem:[#allocation2 + $0x10] sm:$0xff] %v1002_v2  ;;  %s945_s11 = smov 96   ;;  %s946_s12 = smov 98   ;;  %882 = vset.pattern.permute.xlu1 %v948_v19  ;;  %883 = vset.pattern.permute.xlu0 %v948_v19  ;;  %v371_v20 = vld [vmem:[%s1198_s2] sm:$0xf]  ;;  %v44_v22 = vand.u32 127, %v43_v21 }
  0x17   :  { %s947_s13 = smov 94   ;;  %vm145_vm0 = vcmask 261120   ;;  %vm187_vm1 = vcmask 15360   ;;  %vm117_vm6 = vcmask 277504   ;;  %vm162_vm7 = vcmask 244736  }
  0x18   :  { %v45_v23 = vadd.s32 128, %v44_v22  ;;  %v47_v26 = vadd.s32 384, %v44_v22  ;;  %v46_v27 = vadd.s32 256, %v44_v22  ;;  %v52_v32 = vand.u32 15, %v44_v22  ;;  %v370_v50 = vld [vmem:[%s1197_s1] sm:$0xf] }
  0x19   :  { %vm353_vm9 = vcmask 1043456   ;;  %vm224_vm13 = vcmask 1031168   ;;  %vm277_vm14 = vcmask 785408   ;;  %vm252_vm15 = vcmask 801792  }
  0x1a   :  { %v59_v28 = vand.u32 15, %v45_v23  ;;  %v73_v31 = vand.u32 15, %v47_v26  ;;  %v66_v33 = vand.u32 15, %v46_v27  ;;  %vm1033_vm4 = vcmp.ge.s32.totalorder %v52_v32, 2 }
  0x1b   :  { %v214_v15 = vld [vmem:[#allocation2 + $0xc] sm:$0xf]  ;;  %vm1060_vm11 = vcmp.lt.s32.totalorder %v52_v32, 14 }
  0x1c   :  { %v104_v3 = vld [vmem:[#allocation2] sm:$0xff]  ;;  %v105_v5 = vld [vmem:[#allocation2 + $0x8] sm:$0xf]  ;;  %v216_v14 = vld [vmem:[#allocation2 + $0x18] sm:$0xf]  ;;  %v837_v17 = vpack.i.bf16 %v214_v15, %v1012_v13  ;;  %vm1025_vm2 = vcmp.ge.s32.totalorder %v59_v28, 2 }
  0x1d   :  { %v106_v4 = vld [vmem:[#allocation2 + $0xc] sm:$0xff]  ;;  %v110_v7 = vcombine.high %v104_v3, %v104_v3  ;;  %v107_v10 = vld [vmem:[#allocation2 + $0x14] sm:$0xf]  ;;  %v842_v16 = vpack.i.bf16 %v216_v14, %v1008_v12  ;;  %vm1029_vm3 = vcmp.ge.s32.totalorder %v73_v31, 2  ;;  %vm1037_vm5 = vcmp.ge.s32.totalorder %v66_v33, 2 }
  0x1e   :  { %v782_v6 = vpack.i.bf16 %v106_v4, %v104_v3  ;;  %v124_v9 = vcombine.high %v106_v4, %v106_v4  ;;  %vm1041_vm8 = vcmp.lt.s32.totalorder %v59_v28, 14  ;;  %vm1056_vm10 = vcmp.lt.s32.totalorder %v73_v31, 14 }
  0x1f   :  { %v797_v8 = vpack.i.bf16 %v105_v5, %v110_v7  ;;  %vm1068_vm12 = vcmp.lt.s32.totalorder %v66_v33, 14 }
  0x20   :  { %783 = vrot.lane.b32.xlu1 %v782_v6, %s940_s0  ;;  %778 = vrot.lane.b32.xlu0 %v782_v6, %s941_s7  ;;  %v802_v11 = vpack.i.bf16 %v107_v10, %v124_v9 }
  0x24   :  { %798 = vrot.lane.b32.xlu1 %v797_v8, %s940_s0  ;;  %788 = vrot.lane.b32.xlu0 %v797_v8, %s941_s7 }
  0x28   :  { %803 = vrot.lane.b32.xlu1 %v802_v11, %s940_s0  ;;  %793 = vrot.lane.b32.xlu0 %v802_v11, %s941_s7 }
  0x2c   :  { %808 = vrot.lane.b32.xlu1 %v797_v8, %s942_s8  ;;  %813 = vrot.lane.b32.xlu0 %v802_v11, %s942_s8 }
  0x30   :  { %828 = vrot.lane.b32.xlu1 %v802_v11, %s943_s9  ;;  %818 = vrot.lane.b32.xlu0 %v797_v8, %s943_s9 }
  0x34   :  { %833 = vrot.lane.b32.xlu1 %v782_v6, %s943_s9  ;;  %823 = vrot.lane.b32.xlu0 %v782_v6, %s942_s8  ;;  %v540_v6 = vld [vmem:[%s1200_s4] sm:$0xf] }
  0x38   :  { %843 = vrot.lane.b32.xlu1 %v842_v16, %s944_s10  ;;  %838 = vrot.lane.b32.xlu0 %v837_v17, %s944_s10 }
  0x3c   :  { %853 = vrot.lane.b32.xlu1 %v837_v17, %s945_s11  ;;  %848 = vrot.lane.b32.xlu0 %v847_v18, %s944_s10 }
  0x40   :  { %863 = vrot.lane.b32.xlu1 %v837_v17, %s946_s12  ;;  %858 = vrot.lane.b32.xlu0 %v842_v16, %s945_s11 }
  0x44   :  { %873 = vrot.lane.b32.xlu1 %v847_v18, %s945_s11  ;;  %868 = vrot.lane.b32.xlu0 %v842_v16, %s946_s12 }
  0x48   :  { %290 = vrot.lane.b32.xlu1 %v1012_v13, %s947_s13  ;;  %878 = vrot.lane.b32.xlu0 %v847_v18, %s946_s12 }
  0x4c   :  { %301 = vrot.lane.b32.xlu1 %v1008_v12, %s947_s13  ;;  %292 = vrot.lane.b32.xlu0 %v214_v15, %s947_s13 }
  0x50   :  { %288 = vrot.lane.b32.xlu1 %v1000_v1, %s947_s13  ;;  %303 = vrot.lane.b32.xlu0 %v216_v14, %s947_s13 }
  0x54   :  { %299 = vrot.lane.b32.xlu0 %v1002_v2, %s947_s13  ;;  %374 = vperm.xlu1 %882, %v371_v20  }
  0x58   :  { %543 = vperm.xlu0 %883, %v540_v6  }
  0x92   :  { %v784_v24 = vpop.permute.xlu1 %783  ;;  %v779_v25 = vpop.permute.xlu0 %778 }
  0x93   :  { %v785_v35 = vunpack.i.l.bf16 %v784_v24  ;;  %v786_v47 = vunpack.i.h.bf16 %v784_v24  ;;  %v781_v48 = vunpack.i.h.bf16 %v779_v25  ;;  %v780_v49 = vunpack.i.l.bf16 %v779_v25 }
  0x96   :  { %v799_v29 = vpop.permute.xlu1 %798  ;;  %v789_v30 = vpop.permute.xlu0 %788 }
  0x97   :  { %v800_v36 = vunpack.i.l.bf16 %v799_v29  ;;  %v791_v37 = vunpack.i.h.bf16 %v789_v30  ;;  %v790_v38 = vunpack.i.l.bf16 %v789_v30  ;;  %v801_v39 = vunpack.i.h.bf16 %v799_v29 }
  0x99   :  { %v1046_v51 = vsel %vm145_vm0, %v785_v35, %v800_v36  ;;  %v189_v52 = vsel %vm187_vm1, %v790_v38, %v791_v37  ;;  %v188_v55 = vsel %vm187_vm1, %v780_v49, %v790_v38  ;;  %v147_v60 = vsel %vm145_vm0, %v800_v36, %v801_v39 }
  0x9a   :  { %v804_v40 = vpop.permute.xlu1 %803  ;;  %v794_v41 = vpop.permute.xlu0 %793  ;;  %v313_v4 = vrot.slane %v1046_v51, 4  ;;  %v203_v5 = vsel %vm1025_vm2, %v189_v52, 0.0  ;;  %v314_v9 = vrot.slane %v147_v60, 4  ;;  %v202_v11 = vsel %vm1033_vm4, %v188_v55, 0.0 }
  0x9b   :  { %v796_v45 = vunpack.i.h.bf16 %v794_v41  ;;  %v795_v46 = vunpack.i.l.bf16 %v794_v41  ;;  %v806_v53 = vunpack.i.h.bf16 %v804_v40  ;;  %v805_v54 = vunpack.i.l.bf16 %v804_v40 }
  0x9c   :  { %v326_v26 = vrot.slane %v203_v5, 4  ;;  %v325_v28 = vrot.slane %v202_v11, 4 }
  0x9d   :  { %v198_v56 = vsel %vm187_vm1, %v781_v48, %v795_v46  ;;  %v199_v57 = vsel %vm187_vm1, %v795_v46, %v796_v45  ;;  %v154_v8 = vsel %vm145_vm0, %v786_v47, %v805_v54  ;;  %v155_v10 = vsel %vm145_vm0, %v805_v54, %v806_v53 }
  0x9e   :  { %v809_v58 = vpop.permute.xlu1 %808  ;;  %v814_v59 = vpop.permute.xlu0 %813  ;;  %v205_v19 = vsel %vm1029_vm3, %v199_v57, 0.0  ;;  %v204_v20 = vsel %vm1037_vm5, %v198_v56, 0.0  ;;  %v315_v25 = vrot.slane %v154_v8, 4  ;;  %v316_v27 = vrot.slane %v155_v10, 4 }
  0x9f   :  { %v811_v61 = vunpack.i.h.bf16 %v809_v58  ;;  %v810_v62 = vunpack.i.l.bf16 %v809_v58  ;;  %v816_v63 = vunpack.i.h.bf16 %v814_v59  ;;  %v815_v3 = vunpack.i.l.bf16 %v814_v59 }
  0xa0   :  { %v328_v38 = vrot.slane %v205_v19, 4  ;;  %v327_v39 = vrot.slane %v204_v20, 4  ;;  %vm294_vm0 = vcmask 769024   ;;  %vm377_vm1 = vcmask 293888  }
  0xa1   :  { %v119_v17 = vsel %vm117_vm6, %v810_v62, %v811_v61  ;;  %v132_v18 = vsel %vm117_vm6, %v815_v3, %v816_v63 }
  0xa2   :  { %v829_v15 = vpop.permute.xlu1 %828  ;;  %v819_v16 = vpop.permute.xlu0 %818  ;;  %v136_v29 = vsel %vm1025_vm2, %v119_v17, 0.0  ;;  %v138_v31 = vsel %vm1029_vm3, %v132_v18, 0.0 }
  0xa3   :  { %v831_v21 = vunpack.i.h.bf16 %v829_v15  ;;  %v830_v22 = vunpack.i.l.bf16 %v829_v15  ;;  %v821_v23 = vunpack.i.h.bf16 %v819_v16  ;;  %v820_v24 = vunpack.i.l.bf16 %v819_v16 }
  0xa4   :  { %v355_v47 = vsel %vm353_vm9, %v136_v29, %v314_v9  ;;  %v357_v49 = vsel %vm353_vm9, %v138_v31, %v316_v27 }
  0xa5   :  { %v164_v30 = vsel %vm162_vm7, %v820_v24, %v821_v23  ;;  %v174_v32 = vsel %vm162_vm7, %v830_v22, %v831_v21 }
  0xa6   :  { %v834_v33 = vpop.permute.xlu1 %833  ;;  %v824_v35 = vpop.permute.xlu0 %823  ;;  %v178_v36 = vsel %vm1041_vm8, %v164_v30, 0.0  ;;  %v180_v37 = vsel %vm1056_vm10, %v174_v32, 0.0 }
  0xa7   :  { %v836_v40 = vunpack.i.h.bf16 %v834_v33  ;;  %v835_v41 = vunpack.i.l.bf16 %v834_v33  ;;  %v826_v45 = vunpack.i.h.bf16 %v824_v35  ;;  %v825_v46 = vunpack.i.l.bf16 %v824_v35 }
  0xa8   :  { %v359_v48 = vsel %vm353_vm9, %v178_v36, %v326_v26  ;;  %v361_v51 = vsel %vm353_vm9, %v180_v37, %v328_v38 }
  0xa9   :  { %v747_v52 = vpack.c.bf16 %v359_v48, %v355_v47  ;;  %v755_v53 = vpack.c.bf16 %v361_v51, %v357_v49  ;;  %v118_v54 = vsel %vm117_vm6, %v825_v46, %v810_v62  ;;  %v163_v55 = vsel %vm162_vm7, %v835_v41, %v820_v24 }
  0xaa   :  { %v844_v56 = vpop.permute.xlu1 %843  ;;  %v839_v57 = vpop.permute.xlu0 %838  ;;  %v135_v58 = vsel %vm1033_vm4, %v118_v54, 0.0  ;;  %v177_v59 = vsel %vm1060_vm11, %v163_v55, 0.0  ;;  %v131_v60 = vsel %vm117_vm6, %v826_v45, %v815_v3  ;;  %v173_v61 = vsel %vm162_vm7, %v836_v40, %v830_v22 }
  0xab   :  { %v846_v63 = vunpack.i.h.bf16 %v844_v56  ;;  %v845_v5 = vunpack.i.l.bf16 %v844_v56  ;;  %v841_v8 = vunpack.i.h.bf16 %v839_v57  ;;  %v840_v9 = vunpack.i.l.bf16 %v839_v57  ;;  %748 = vmatprep.subr.bf16.mxu0 %v747_v52  ;;  %756 = vmatprep.subr.bf16.mxu1 %v755_v53 }
  0xac   :  { %v354_v62 = vsel %vm353_vm9, %v135_v58, %v313_v4  ;;  %v358_v10 = vsel %vm353_vm9, %v177_v59, %v325_v28  ;;  %v137_v11 = vsel %vm1037_vm5, %v131_v60, 0.0  ;;  %v179_v15 = vsel %vm1068_vm12, %v173_v61, 0.0 }
  0xad   :  { %v749_v16 = vpack.c.bf16 %v358_v10, %v354_v62  ;;  %v356_v3 = vsel %vm353_vm9, %v137_v11, %v315_v25  ;;  %v226_v17 = vsel %vm224_vm13, %v840_v9, %v841_v8  ;;  %v360_v20 = vsel %vm353_vm9, %v179_v15, %v327_v39 }
  0xae   :  { %v854_v18 = vpop.permute.xlu1 %853  ;;  %v849_v19 = vpop.permute.xlu0 %848  ;;  %v239_v22 = vsel %vm224_vm13, %v845_v5, %v846_v63  ;;  %v757_v24 = vpack.c.bf16 %v360_v20, %v356_v3  ;;  %v243_v26 = vsel %vm1041_vm8, %v226_v17, 0.0 }
  0xaf   :  { %v856_v21 = vunpack.i.h.bf16 %v854_v18  ;;  %v855_v4 = vunpack.i.l.bf16 %v854_v18  ;;  %750 = vmatpush1.bf16.msra.mxu0 %v749_v16  ;;  %v850_v23 = vunpack.i.l.bf16 %v849_v19  ;;  %v851_v25 = vunpack.i.h.bf16 %v849_v19 }
  0xb0   :  { %758 = vmatpush1.bf16.msra.mxu1 %v757_v24  ;;  %v245_v30 = vsel %vm1056_vm10, %v239_v22, 0.0  ;;  %v338_v35 = vrot.slane %v243_v26, 4 }
  0xb1   :  { %v279_v27 = vsel %vm277_vm14, %v855_v4, %v856_v21  ;;  %v225_v31 = vsel %vm224_vm13, %v850_v23, %v840_v9  ;;  %v238_v39 = vsel %vm224_vm13, %v851_v25, %v845_v5  ;;  %v340_v41 = vrot.slane %v245_v30, 4 }
  0xb2   :  { %v864_v28 = vpop.permute.xlu1 %863  ;;  %v859_v29 = vpop.permute.xlu0 %858  ;;  %v346_v36 = vrot.slane %v279_v27, 4  ;;  %v242_v45 = vsel %vm1060_vm11, %v225_v31, 0.0  ;;  %v244_v54 = vsel %vm1068_vm12, %v238_v39, 0.0  ;;  %v363_v56 = vsel %vm353_vm9, %v1012_v13, %v338_v35 }
  0xb3   :  { %v866_v32 = vunpack.i.h.bf16 %v864_v28  ;;  %v865_v33 = vunpack.i.l.bf16 %v864_v28  ;;  %v861_v37 = vunpack.i.h.bf16 %v859_v29  ;;  %v860_v38 = vunpack.i.l.bf16 %v859_v29 }
  0xb4   :  { %v337_v8 = vrot.slane %v242_v45, 4  ;;  %v339_v13 = vrot.slane %v244_v54, 4  ;;  %v365_v15 = vsel %vm353_vm9, %v1008_v12, %v340_v41 }
  0xb5   :  { %v254_v40 = vsel %vm252_vm15, %v865_v33, %v866_v32  ;;  %v287_v49 = vsel %vm277_vm14, %v860_v38, %v861_v37 }
  0xb6   :  { %v874_v46 = vpop.permute.xlu1 %873  ;;  %v869_v47 = vpop.permute.xlu0 %868  ;;  %v268_v48 = vsel %vm1025_vm2, %v254_v40, 0.0  ;;  %v348_v60 = vrot.slane %v287_v49, 4  ;;  %v364_v24 = vsel %vm353_vm9, %v1002_v2, %v339_v13  ;;  %vm546_vm2 = vcmask 31744  }
  0xb7   :  { %v876_v51 = vunpack.i.h.bf16 %v874_v46  ;;  %v875_v52 = vunpack.i.l.bf16 %v874_v46  ;;  %v871_v53 = vunpack.i.h.bf16 %v869_v47  ;;  %v870_v55 = vunpack.i.l.bf16 %v869_v47 }
  0xb8   :  { %v367_v57 = vsel %vm353_vm9, %v268_v48, %v346_v36 }
  0xb9   :  { %v278_v58 = vsel %vm277_vm14, %v875_v52, %v855_v4  ;;  %v751_v59 = vpack.c.bf16 %v367_v57, %v363_v56  ;;  %v286_v34 = vsel %vm277_vm14, %v876_v51, %v860_v38  ;;  %v264_v61 = vsel %vm252_vm15, %v870_v55, %v871_v53 }
  0xba   :  { %v291_v63 = vpop.permute.xlu1 %290  ;;  %v879_v5 = vpop.permute.xlu0 %878  ;;  %v270_v10 = vsel %vm1029_vm3, %v264_v61, 0.0  ;;  %v345_v11 = vrot.slane %v278_v58, 4  ;;  %v347_v3 = vrot.slane %v286_v34, 4  ;;  %v362_v4 = vsel %vm353_vm9, %v1000_v1, %v337_v8 }
  0xbb   :  { %v881_v9 = vunpack.i.h.bf16 %v879_v5  ;;  %v880_v62 = vunpack.i.l.bf16 %v879_v5  ;;  %752 = vmatprep.subr.bf16.mxu0 %v751_v59  ;;  %v369_v16 = vsel %vm353_vm9, %v270_v10, %v348_v60 }
  0xbc   :  { %v759_v19 = vpack.c.bf16 %v369_v16, %v365_v15 }
  0xbd   :  { %v253_v17 = vsel %vm252_vm15, %v880_v62, %v865_v33  ;;  %v263_v18 = vsel %vm252_vm15, %v881_v9, %v870_v55 }
  0xbe   :  { %v302_v20 = vpop.permute.xlu1 %301  ;;  %v293_v21 = vpop.permute.xlu0 %292  ;;  %v267_v42 = vsel %vm1033_vm4, %v253_v17, 0.0  ;;  %v269_v22 = vsel %vm1037_vm5, %v263_v18, 0.0  ;;  %760 = vmatprep.subr.bf16.mxu1 %v759_v19 }
  0xbf   :  { %v296_v12 = vsel %vm294_vm0, %v291_v63, %v293_v21  ;;  %v366_v23 = vsel %vm353_vm9, %v267_v42, %v345_v11  ;;  %v368_v26 = vsel %vm353_vm9, %v269_v22, %v347_v3 }
  0xc0   :  { %v753_v27 = vpack.c.bf16 %v366_v23, %v362_v4  ;;  %v761_v25 = vpack.c.bf16 %v368_v26, %v364_v24  ;;  %v310_v43 = vsel %vm1041_vm8, %v296_v12, 0.0 }
  0xc2   :  { %v289_v28 = vpop.permute.xlu1 %288  ;;  %v304_v29 = vpop.permute.xlu0 %303  ;;  %754 = vmatpush1.bf16.msra.mxu0 %v753_v27  ;;  %762 = vmatpush1.bf16.msra.mxu1 %v761_v25 }
  0xc3   :  { %v295_v44 = vsel %vm294_vm0, %v289_v28, %v291_v63  ;;  %v306_v30 = vsel %vm294_vm0, %v302_v20, %v304_v29  ;;  %735 = vmatprep.subr.msk.mxu0 %vm353_vm9, %v310_v43 }
  0xc4   :  { %v309_v31 = vsel %vm1060_vm11, %v295_v44, 0.0  ;;  %v312_v32 = vsel %vm1056_vm10, %v306_v30, 0.0 }
  0xc5   :  { %738 = vmatprep.subr.msk.mxu1 %vm353_vm9, %v312_v32 }
  0xc6   :  { %v300_v33 = vpop.permute.xlu0 %299  ;;  %736 = vmatpush1.msk.msra.mxu0 %vm353_vm9, %v309_v31 }
  0xc7   :  { %v305_v35 = vsel %vm294_vm0, %v300_v33, %v302_v20  ;;  %737 = vmatmul.mubr.msk.f32.vlgmr.msra.gmra.mrb[0].mxu0 %vm377_vm1, %v370_v50 }
  0xc8   :  { %v311_v7 = vsel %vm1068_vm12, %v305_v35, 0.0  ;;  %626 = vmatprep.mubr.f32.mxu0 %v939_v0 }
  0xc9   :  { %739 = vmatpush1.msk.msra.mxu1 %vm353_vm9, %v311_v7 }
  0xca   :  { %740 = vmatmul.mubr.msk.f32.vlgmr.msra.gmra.mrb[0].mxu1 %vm377_vm1, %v370_v50 }
  0xcb   :  { %697 = vmatprep.mubr.f32.mxu1 %v939_v0  ;;  %v539_v0 = vld [vmem:[%s1199_s3] sm:$0xf]  ;;  %s949_s3 = smov [#allocation6]  }
  0xcc   :  { %s723_s4 = sshll.u32 %s949_s3, 4  ;;  %s724_s4 = int_to_ptr.vmem [resolvable:$true] %s723_s4 }
  0xcd   :  { %s910_s20 = scalar_lea.vmem %s724_s4, 256  ;;  %p915_p9 = scmp.lt.s32.totalorder %s724_s4, %s724_s4 }
  0xce   :  { %p911_p8 = scmp.ne.s32.totalorder %s724_s4, %s910_s20  ;;  %p916_p10 = scmp.lt.s32.totalorder %s910_s20, %s910_s20 }
  0xd0   :  { %p917_p11 = por %p916_p10, %p915_p9 }
  0xd2   :  { %p918_p12 = pnand %p917_p11, %p911_p8 }
  0xd3   :  { %v375_v36 = vpop.permute.xlu1 %374 }
  0xd7   :  { %v544_v52 = vpop.permute.xlu0 %543 }
 0x19a   :  { %v459_v37 = vpop.f32.mrb[0].mxu0 }
 0x19b   :  { %v460_v38 = vadd.f32 %v459_v37, %v375_v36  ;;  %v461_v39 = vpop.f32.mrb[1].mxu0 }
 0x19c   :  { %v462_v40 = vadd.f32 %v461_v39, %v375_v36 }
 0x19d   :  { %v535_v41 = vmax.f32 %v460_v38, 0.0  ;;  %v530_v14 = vpop.f32.mrb[0].mxu1 }
 0x19e   :  { %v536_v45 = vmax.f32 %v462_v40, 0.0  ;;  %v531_v46 = vadd.f32 %v530_v14, %v375_v36  ;;  %v532_v47 = vpop.f32.mrb[1].mxu1 }
 0x19f   :  { %v533_v48 = vadd.f32 %v532_v47, %v375_v36 }
 0x1a0   :  { %741 = vmatprep.subr.msk.mxu0 %vm353_vm9, %v536_v45  ;;  %v537_v51 = vmax.f32 %v531_v46, 0.0 }
 0x1a1   :  { %v538_v49 = vmax.f32 %v533_v48, 0.0  ;;  %742 = vmatpush1.msk.msra.mxu0 %vm353_vm9, %v535_v41 }
 0x1a2   :  { %743 = vmatmul.mubr.msk.f32.vlgmr.msra.gmra.mrb[2].mxu0 %vm546_vm2, %v539_v0 }
 0x1a3   :  { %744 = vmatprep.subr.msk.mxu1 %vm353_vm9, %v538_v49 }
 0x1a4   :  { %745 = vmatpush1.msk.msra.mxu1 %vm353_vm9, %v537_v51 }
 0x1a5   :  { %746 = vmatmul.mubr.msk.f32.vlgmr.msra.gmra.mrb[2].mxu1 %vm546_vm2, %v539_v0 }
 0x275   :  { %v628_v53 = vpop.f32.mrb[2].mxu0 }
 0x276   :  { %v629_v54 = vadd.f32 %v628_v53, %v544_v52  ;;  %v630_v55 = vpop.f32.mrb[3].mxu0 }
 0x277   :  { %v631_v56 = vadd.f32 %v630_v55, %v544_v52 }
 0x278   :  { %v699_v57 = vpop.f32.mrb[2].mxu1 }
 0x279   :  { %v700_v58 = vadd.f32 %v699_v57, %v544_v52  ;;  %v706_v59 = vcombine.low %v629_v54, %v631_v56  ;;  %v701_v60 = vpop.f32.mrb[3].mxu1 }
 0x27a   :  { %v702_v34 = vadd.f32 %v701_v60, %v544_v52 }
 0x27b   :  { %v708_v61 = vadd.f32 %v706_v59, %v1000_v1 }
 0x27c   :  { %v713_v63 = vcombine.low %v700_v58, %v702_v34 }
 0x27d   :  { %709 = vst [vmem:[#allocation6] sm:$0xff] %v708_v61 }
 0x27e   :  { %v715_v5 = vadd.f32 %v713_v63, %v1002_v2 }
 0x280   :  { %717 = vst [vmem:[#allocation6 + $0x8] sm:$0xff] %v715_v5 }
 0x281   :  { %921 = shalt.err (!%p918_p12)
}
 0x282   :  { %s922_s23 = scalar_lea.hbm %s1201_s5, 256 }
 0x283   :  { %p923_p13 = scmp.ne.s32.totalorder %s1201_s5, %s922_s23  ;;  %p926_p0 = scmp.lt.u32.totalorder %s922_s23, %s1201_s5 }
 0x285   :  { %p928_p1 = pnand %p926_p0, %p923_p13 }
 0x287   :  { %931 = shalt.err (!%p928_p1)
}
 0x288   :  { %729 = dma.vmem_to_hbm [thread:$0]  %s724_s4, 256, %s1201_s5, [#allocation5], %s937_s28, %s937_s28, %s938_s29  }
 0x289   :  { %934 = dma.done.wait [#allocation5], 256  }
 0x28a   :  { %935 = vsyncadd [#allocation5], 4294967040 }
 0x28b   :  { %733 = vsyncpa [#allocation4], 1 }
 0x28c   :  { %734 = vsyncpa [#allocation5], 1 }

</bundles_post_ra>
